<compile_context>
chip_gen: v7x
topology: tpu7x:2x2x1
jax: 0.10.0
libtpu: 0.0.40
codegen_flags: <defaults>
</compile_context>

<pallas_src>
import math

import jax
import jax.numpy as jnp
from jax.experimental import pallas as pl
from jax.experimental.pallas import tpu as pltpu


# ----------------------------- Pallas kernel ---------------------------------
def _upsample_conv_kernel(slab_ref, w9_ref, bias_ref, out_ref):
    """Fused nearest-2x upsample + 3x3 conv (pad=1): one MXU matmul per grid step.

    slab_ref : (1, 9*Cin, HWT) bf16
        im2col of the zero-padded ORIGINAL-resolution input:
        slab[0, (dy*3 + dx)*Cin + c, a*W + b] == x_pad[c, a + dy, b + dx].
    w9_ref   : (4*Cout, 9*Cin) bf16   phase-packed folded weights, row (p*2+q)*Cout + o.
    bias_ref : (4*Cout, 1) f32        bias replicated once per output phase.
    out_ref  : (1, 4*Cout, HWT) f32   out[0, (p*2+q)*Cout + o, a*W + b] == y[o, 2a+p, 2b+q].
    """
    acc = jax.lax.dot_general(
        w9_ref[...], slab_ref[0],                       # canonical (M,K) x (K,N) MXU form
        dimension_numbers=(((1,), (0,)), ((), ())),
        preferred_element_type=jnp.float32,             # f32 accumulate
    )                                                   # (4*Cout, HWT) f32
    out_ref[0, :, :] = acc + bias_ref[...]              # single lane-dense store


# ----------------------------- parameter folding -----------------------------
def prepare_params(w, b):
    """Fold the 3x3 conv into one phase-packed (4*Cout, 9*Cin) matrix, done once.

    For nearest-2x upsample then 3x3 conv (pad 1), output row 2a+p at conv tap dy reads
    original-resolution padded row a + dy', dy' = (p + dy + 1) // 2:
        p=0: dy=0 -> dy'=0 ;  dy in {1,2} -> dy'=1
        p=1: dy in {0,1} -> dy'=1 ;  dy=2 -> dy'=2
    (identically for columns / dx / q).  G[p, dy', dy] encodes that mapping.
    """
    Cout, Cin, kh, kw = w.shape
    assert (kh, kw) == (3, 3), "Upsample conv uses a 3x3 kernel"
    G = jnp.array([[[1., 0., 0.],
                    [0., 1., 1.],
                    [0., 0., 0.]],
                   [[0., 0., 0.],
                    [1., 1., 0.],
                    [0., 0., 1.]]], dtype=jnp.float32)          # G[p, dy', dy]
    # w9eff[p, q, o, dy', dx', i] = sum_{dy,dx} G[p,dy',dy] * G[q,dx',dx] * w[o,i,dy,dx]
    w9eff = jnp.einsum('pad,qbe,oide->pqoabi', G, G, w.astype(jnp.float32))
    # rows: (p*2+q)*Cout + o ; cols: (dy'*3 + dx')*Cin + i  (matches the im2col slab)
    w9 = w9eff.reshape(4 * Cout, 9 * Cin).astype(jnp.bfloat16)  # bf16 MXU operand
    bias4 = jnp.tile(b.astype(jnp.float32), 4).reshape(4 * Cout, 1)
    return {"w9": w9, "bias4": bias4}


# ----------------------------- helpers ----------------------------------------
def _pick_hw_tile(HW, max_tile=1024):
    """Largest 128-multiple divisor of HW not exceeding max_tile (HW itself if small)."""
    if HW <= max_tile:
        return HW
    for t in range(max_tile - (max_tile % 128), 127, -128):
        if HW % t == 0:
            return t
    return HW


# ----------------------------- module forward --------------------------------
def upsample_forward(params, x):
    """x: (N, Cin, H, W) NCHW -> (N, Cout, 2H, 2W). Nearest-2x upsample + 3x3 conv."""
    w9, bias4 = params["w9"], params["bias4"]
    N, Cin, H, W = x.shape
    Cout4 = bias4.shape[0]
    Cout = Cout4 // 4
    HW = H * W
    assert w9.shape == (Cout4, 9 * Cin)
    # Lane-dense stores / full-vreg loads rely on this; pad spatially for other shapes.
    assert HW % 128 == 0, f"H*W={HW} must be a multiple of 128 (pad the feature map)"

    # --- XLA glue: one bf16 cast, zero-pad, 9-tap im2col built directly in NCHW order
    # (no transposes), K on sublanes and flattened pixels on lanes.
    xb = x.astype(jnp.bfloat16)
    x_pad = jnp.pad(xb, ((0, 0), (0, 0), (1, 1), (1, 1)))          # (N, Cin, H+2, W+2)
    taps = [x_pad[:, :, dy:dy + H, dx:dx + W].reshape(N, Cin, HW)
            for dy in range(3) for dx in range(3)]
    slab = jnp.stack(taps, axis=1).reshape(N, 9 * Cin, HW)         # (N, 9*Cin, HW) bf16

    # --- tile the flattened-pixel axis so large feature maps stay pipelined in VMEM.
    hwt = _pick_hw_tile(HW)
    T = HW // hwt

    # Per-step VMEM: double-buffered slab + out tiles, plus the resident weights/bias.
    vmem_est = (2 * (9 * Cin * hwt * 2 + Cout4 * hwt * 4)
                + Cout4 * 9 * Cin * 2 + Cout4 * 4)
    vmem_limit = int(vmem_est * 3 // 2) if vmem_est > 12 * 1024 * 1024 else None

    out = pl.pallas_call(
        _upsample_conv_kernel,
        out_shape=jax.ShapeDtypeStruct((N, Cout4, HW), jnp.float32),
        grid=(N, T),
        in_specs=[
            pl.BlockSpec((1, 9 * Cin, hwt), lambda n, t: (n, 0, t)),
            pl.BlockSpec((Cout4, 9 * Cin), lambda n, t: (0, 0)),   # resident across grid
            pl.BlockSpec((Cout4, 1), lambda n, t: (0, 0)),
        ],
        out_specs=pl.BlockSpec((1, Cout4, hwt), lambda n, t: (n, 0, t)),
        compiler_params=pltpu.CompilerParams(
            dimension_semantics=("parallel", "parallel"),
            vmem_limit_bytes=vmem_limit),
    )(slab, w9, bias4)

    # --- depth-to-space: (n, (p,q,o), a*W+b) -> NCHW (n, o, 2a+p, 2b+q): one XLA pass.
    y = out.reshape(N, 2, 2, Cout, H, W).transpose(0, 3, 4, 1, 5, 2)
    return y.reshape(N, Cout, 2 * H, 2 * W)


# ----------------------------- plain-JAX reference ---------------------------
def upsample_reference(x, w, b):
    """F.interpolate(scale_factor=2, mode='nearest') + Conv2d(3x3, padding=1), f32."""
    up = jnp.repeat(jnp.repeat(x.astype(jnp.float32), 2, axis=2), 2, axis=3)
    y = jax.lax.conv_general_dilated(
        up, w.astype(jnp.float32), window_strides=(1, 1),
        padding=((1, 1), (1, 1)), dimension_numbers=('NCHW', 'OIHW', 'NCHW'))
    return y + b.astype(jnp.float32)[None, :, None, None]


# ----------------------------- main -------------------------------------------
if __name__ == "__main__":
    # Upsample(channels=32, use_conv=True, dims=2) on a 16x16 feature map, batch=2.
    N, C, H, W = 2, 32, 16, 16
    key = jax.random.PRNGKey(0)
    kx, kw, kb = jax.random.split(key, 3)
    x = jax.random.normal(kx, (N, C, H, W), jnp.float32)
    fan_in = C * 3 * 3
    w = jax.random.normal(kw, (C, C, 3, 3), jnp.float32) / math.sqrt(fan_in)
    b = 0.1 * jax.random.normal(kb, (C,), jnp.float32)

    params = prepare_params(w, b)                  # weight folding done once, not per step
    fwd = jax.jit(upsample_forward)
    y = jax.block_until_ready(fwd(params, x))

    assert y.shape == (N, C, 2 * H, 2 * W), y.shape
    assert y.dtype == jnp.float32

    y_ref = upsample_reference(x, w, b)
    rel_err = jnp.sqrt(jnp.sum((y - y_ref) ** 2) / jnp.sum(y_ref ** 2))
    assert float(rel_err) < 2e-2, f"relative error too high: {float(rel_err)}"
    print("KERNEL_OK")
</pallas_src>

<mosaic_0001>
module attributes {stable_mosaic.version = 11 : i64} {
  func.func @_upsample_conv_kernel(%arg0: i32, %arg1: i32, %arg2: memref<1x288x256xbf16, #tpu.memory_space<vmem>>, %arg3: memref<128x288xbf16, #tpu.memory_space<vmem>>, %arg4: memref<128x1xf32, #tpu.memory_space<vmem>>, %arg5: memref<1x128x256xf32, #tpu.memory_space<vmem>>) attributes {dimension_semantics = [#tpu.dimension_semantics<parallel>, #tpu.dimension_semantics<parallel>], iteration_bounds = array<i64: 2, 1>, scalar_prefetch = 0 : i64, scratch_operands = 0 : i64, tpu.core_type = #tpu.core_type<tc>, window_params = [{transform_indices = @transform_0, window_bounds = array<i64: 1, 288, 256>}, {pipeline_mode = #tpu.pipeline_mode<synchronous>, transform_indices = @transform_1, window_bounds = array<i64: 128, 288>}, {pipeline_mode = #tpu.pipeline_mode<synchronous>, transform_indices = @transform_2, window_bounds = array<i64: 128, 1>}, {transform_indices = @transform_3, window_bounds = array<i64: 1, 128, 256>}]} {
    %c0 = arith.constant 0 : index
    %c0_0 = arith.constant 0 : index
    %0 = vector.load %arg3[%c0, %c0_0] : memref<128x288xbf16, #tpu.memory_space<vmem>>, vector<128x288xbf16>
    %c0_1 = arith.constant 0 : index
    %c0_2 = arith.constant 0 : index
    %c0_3 = arith.constant 0 : index
    %1 = vector.load %arg2[%c0_1, %c0_2, %c0_3] : memref<1x288x256xbf16, #tpu.memory_space<vmem>>, vector<1x288x256xbf16>
    %2 = vector.shape_cast %1 : vector<1x288x256xbf16> to vector<288x256xbf16>
    %cst = arith.constant dense<0.000000e+00> : vector<128x256xf32>
    %3 = tpu.matmul %0, %2, %cst {dimension_numbers = #tpu.dot_dimension_numbers<[1], [0], [0], [1], [0, 0, 1, 1], [], []>} : vector<128x288xbf16>, vector<288x256xbf16>, vector<128x256xf32> -> vector<128x256xf32>
    %c0_4 = arith.constant 0 : index
    %c0_5 = arith.constant 0 : index
    %4 = vector.load %arg4[%c0_4, %c0_5] : memref<128x1xf32, #tpu.memory_space<vmem>>, vector<128x1xf32>
    %5 = vector.broadcast %4 : vector<128x1xf32> to vector<128x256xf32>
    %6 = arith.addf %3, %5 : vector<128x256xf32>
    %c0_6 = arith.constant 0 : index
    %c0_7 = arith.constant 0 : index
    %c0_8 = arith.constant 0 : index
    %7 = vector.load %arg5[%c0_6, %c0_7, %c0_8] : memref<1x128x256xf32, #tpu.memory_space<vmem>>, vector<1x128x256xf32>
    %8 = vector.shape_cast %7 : vector<1x128x256xf32> to vector<128x256xf32>
    %9 = vector.shape_cast %6 : vector<128x256xf32> to vector<1x128x256xf32>
    tpu.vector_store %arg5[%c0_6, %c0_7, %c0_8], %9 {strides = array<i32>} : memref<1x128x256xf32, #tpu.memory_space<vmem>>, vector<1x128x256xf32>,
    return
  }
  func.func @transform_0(%arg0: i32, %arg1: i32) -> (i32, i32, i32) {
    %c0_i32 = arith.constant 0 : i32
    %c0_i32_0 = arith.constant 0 : i32
    return %arg0, %c0_i32, %arg1 : i32, i32, i32
  }
  func.func @transform_1(%arg0: i32, %arg1: i32) -> (i32, i32) {
    %c0_i32 = arith.constant 0 : i32
    %c0_i32_0 = arith.constant 0 : i32
    %c0_i32_1 = arith.constant 0 : i32
    return %c0_i32, %c0_i32_0 : i32, i32
  }
  func.func @transform_2(%arg0: i32, %arg1: i32) -> (i32, i32) {
    %c0_i32 = arith.constant 0 : i32
    %c0_i32_0 = arith.constant 0 : i32
    %c0_i32_1 = arith.constant 0 : i32
    return %c0_i32, %c0_i32_0 : i32, i32
  }
  func.func @transform_3(%arg0: i32, %arg1: i32) -> (i32, i32, i32) {
    %c0_i32 = arith.constant 0 : i32
    %c0_i32_0 = arith.constant 0 : i32
    return %arg0, %c0_i32, %arg1 : i32, i32, i32
  }
}

</mosaic_0001>

<bundles_post_ra>
// kernel: upsample_forward.1
= control target key start
LH: loop header
LB: loop body
LE: loop exit
PB: predicated region body
PF: predicated region fallthrough
CT: control target
= control target key end

     0   :  { %s1347_s12 = smov 0   ;;  %s1349_s13 = smov 0   ;;  %s1666_s0 = inlined_call_operand.vmem [shape: bf16[2,288,256], index: 0, kind: input, shape index: {}]   ;;  %s1667_s1 = inlined_call_operand.vmem [shape: bf16[128,288], index: 1, kind: input, shape index: {}]   ;;  %s1668_s2 = inlined_call_operand.vmem [shape: f32[128,1], index: 2, kind: input, shape index: {}]   ;;  %s1669_s3 = inlined_call_operand.vmem [shape: f32[2,128,256], index: 3, kind: output, shape index: {}]  }
   0x1   :  { %s1351_s14 = smov 0  }
   0x2 LB: > { %s25_s15 = sadd.s32 1, %s1320_s13  ;;  %p1049_p0 = scmp.ge.s32.totalorder %s1324_s14, 1  ;;  %s1324_s14 = sphi %s1351_s14, %s13_s14   ;;  %s1320_s13 = sphi %s1349_s13, %s1671_s13   ;;  %s1316_s12 = sphi %s1347_s12, %s1670_s12  }
   0x3   : > { %p27_p1 = scmp.ge.s32.totalorder %s25_s15, 2  ;;  %p158_p2 = scmp.lt.s32.totalorder %s1324_s14, 3 }
   0x5   : > { %s1673_s15 = smov (%p27_p1, %s25_s15), 0  ;;  %p159_p3 = pnand %p1049_p0, %p158_p2 }
   0x6   : > { %p191_p4 = scmp.lt.s32.totalorder (!%p159_p3), %s1316_s12, 1  ;;  %v1326_v0 = vmov (!%p159_p3), 0   ;;  %v1272_v1 = vld [vmem:[%s1667_s1 + $0x4] ss:$12 sps:$4 sm:$0xff] (!%p159_p3)   ;;  %v1273_v21 = vld [vmem:[%s1667_s1 + $0x8] ss:$12 sps:$4 sm:$0xff] (!%p159_p3)  }
   0x7   : > { %162 = sbr.rel (%p159_p3) target bundleno = 359 (0x167), region = 32  ;;  %845 = vmatprep.mubr.bf16.mxu0 (!%p159_p3), %v1326_v0  ;;  %1214 = vset.pattern.permute.xlu0 (!%p159_p3), %v1326_v0  ;;  %vm675_vm0 = vcmask (!%p159_p3), 261120   ;;  %v1276_v26 = vld [vmem:[%s1667_s1 + $0x20] ss:$12 sps:$4 sm:$0xff] (!%p159_p3)   ;;  %v281_v30 = vld [vmem:[%s1668_s2 + $0x10] sm:$0xff] (!%p159_p3)  ;;  %v282_v32 = vld [vmem:[%s1668_s2 + $0x18] sm:$0xff] (!%p159_p3) }
   0x8   : > { %1215 = vset.pattern.permute.xlu1 (!%p159_p3), %v1326_v0  ;;  %732 = vmatprep.mubr.bf16.mxu1 (!%p159_p3), %v1272_v1  ;;  %v279_v28 = vld [vmem:[%s1668_s2] sm:$0xff] (!%p159_p3)  ;;  %v280_v31 = vld [vmem:[%s1668_s2 + $0x8] sm:$0xff] (!%p159_p3)  ;;  %v285_v40 = vld [vmem:[%s1668_s2 + $0x30] sm:$0xff] (!%p159_p3) }
   0x9   : > { %297 = vperm.xlu0 (!%p159_p3), %1214, %v279_v28   ;;  %307 = vperm.xlu1 (!%p159_p3), %1215, %v281_v30   ;;  %v1280_v35 = vld [vmem:[%s1667_s1 + $0x38] ss:$12 sps:$4 sm:$0xff] (!%p159_p3)   ;;  %v284_v37 = vld [vmem:[%s1668_s2 + $0x28] sm:$0xff] (!%p159_p3)  ;;  %v1284_v44 = vld [vmem:[%s1667_s1 + $0x50] ss:$12 sps:$4 sm:$0xff] (!%p159_p3)  }
   0xa   : > { %v283_v36 = vld [vmem:[%s1668_s2 + $0x20] sm:$0xff] (!%p159_p3)  ;;  %v286_v41 = vld [vmem:[%s1668_s2 + $0x38] sm:$0xff] (!%p159_p3)  ;;  %v288_v46 = vld [vmem:[%s1668_s2 + $0x48] sm:$0xff] (!%p159_p3) }
   0xb   : > { %v287_v45 = vld [vmem:[%s1668_s2 + $0x40] sm:$0xff] (!%p159_p3)  ;;  %v289_v49 = vld [vmem:[%s1668_s2 + $0x50] sm:$0xff] (!%p159_p3)  ;;  %v290_v50 = vld [vmem:[%s1668_s2 + $0x58] sm:$0xff] (!%p159_p3) }
   0xc   : > { %v1288_v53 = vld [vmem:[%s1667_s1 + $0x68] ss:$12 sps:$4 sm:$0xff] (!%p159_p3)   ;;  %v291_v54 = vld [vmem:[%s1668_s2 + $0x60] sm:$0xff] (!%p159_p3)  ;;  %v294_v59 = vld [vmem:[%s1668_s2 + $0x78] sm:$0xff] (!%p159_p3) }
   0xd   : > { %302 = vperm.xlu0 (!%p159_p3), %1214, %v280_v31   ;;  %312 = vperm.xlu1 (!%p159_p3), %1215, %v282_v32   ;;  %v292_v55 = vld [vmem:[%s1668_s2 + $0x68] sm:$0xff] (!%p159_p3)  ;;  %v293_v57 = vld [vmem:[%s1668_s2 + $0x70] sm:$0xff] (!%p159_p3)  ;;  %v1277_v62 = vld [vmem:[%s1667_s1 + $0x18] ss:$12 sps:$4 sm:$0xff] (!%p159_p3)  }
   0xe   : > { %s1675_s12 = smov (!%p191_p4, %s1316_s12), 1  ;;  %v1270_v58 = vld [vmem:[%s1667_s1] ss:$12 sps:$4 sm:$0xff]   ;;  %v1274_v60 = vld [vmem:[%s1667_s1 + $0x1c] ss:$12 sps:$4 sm:$0xff]  }
   0xf   : > { %s1188_s18 = smul.u32 288, %s1675_s12  ;;  %v1292_v61 = vld [vmem:[%s1667_s1 + $0x80] ss:$12 sps:$4 sm:$0xff]   ;;  %v1296_v1 = vld [vmem:[%s1667_s1 + $0x98] ss:$12 sps:$4 sm:$0xff]   ;;  %s1123_s5 = sshll.u32 %s1675_s12, 8 }
  0x10   : > { %v1278_v63 = vld [vmem:[%s1667_s1 + $0x34] ss:$12 sps:$4 sm:$0xff]   ;;  %s1575_s8 = scalar_lea.vmem %s1669_s3, %s1123_s5 }
  0x11   : > { %s1377_s21 = scalar_lea.vmem %s1666_s0, %s1188_s18  ;;  %317 = vperm.xlu0 %1214, %v283_v36   ;;  %322 = vperm.xlu1 %1215, %v284_v37  }
  0x12   : > { %v1216_v2 = vld [vmem:[%s1377_s21 + $0x4] ss:$8 sps:$4 sm:$0xff]   ;;  %v1218_v3 = vld [vmem:[%s1377_s21] ss:$8 sps:$4 sm:$0xff]   ;;  %v1219_v4 = vld [vmem:[%s1377_s21 + $0x14] ss:$8 sps:$4 sm:$0xff]  }
  0x13   : > { %700 = vmatprep.subr.bf16.mxu1 %v1216_v2  ;;  %v1221_v5 = vld [vmem:[%s1377_s21 + $0x10] ss:$8 sps:$4 sm:$0xff]   ;;  %v1222_v6 = vld [vmem:[%s1377_s21 + $0x24] ss:$8 sps:$4 sm:$0xff]   ;;  %v1224_v7 = vld [vmem:[%s1377_s21 + $0x20] ss:$8 sps:$4 sm:$0xff]  }
  0x14   : > { %701 = vmatpush1.bf16.msra.mxu1 %v1218_v3  ;;  %v1225_v8 = vld [vmem:[%s1377_s21 + $0x34] ss:$8 sps:$4 sm:$0xff]   ;;  %v1227_v9 = vld [vmem:[%s1377_s21 + $0x30] ss:$8 sps:$4 sm:$0xff]   ;;  %v1228_v10 = vld [vmem:[%s1377_s21 + $0x44] ss:$8 sps:$4 sm:$0xff]  }
  0x15   : > { %702 = vmatprep.subr.bf16.mxu1 %v1219_v4  ;;  %v1230_v11 = vld [vmem:[%s1377_s21 + $0x40] ss:$8 sps:$4 sm:$0xff]   ;;  %v1231_v12 = vld [vmem:[%s1377_s21 + $0x54] ss:$8 sps:$4 sm:$0xff]   ;;  %v1233_v13 = vld [vmem:[%s1377_s21 + $0x50] ss:$8 sps:$4 sm:$0xff]   ;;  %327 = vperm.xlu0 %1214, %v285_v40  }
  0x16   : > { %v1258_v14 = vld [vmem:[%s1377_s21 + $0x104] ss:$8 sps:$4 sm:$0xff]   ;;  %v1262_v16 = vld [vmem:[%s1377_s21 + $0x100] ss:$8 sps:$4 sm:$0xff]   ;;  %v1264_v17 = vld [vmem:[%s1377_s21 + $0x114] ss:$8 sps:$4 sm:$0xff]   ;;  %332 = vperm.xlu1 %1215, %v286_v41  }
  0x17   : > { %v1234_v15 = vld [vmem:[%s1377_s21 + $0x64] ss:$8 sps:$4 sm:$0xff]   ;;  %813 = vmatprep.subr.bf16.mxu0 %v1258_v14  ;;  %v1236_v18 = vld [vmem:[%s1377_s21 + $0x60] ss:$8 sps:$4 sm:$0xff]   ;;  %v1268_v19 = vld [vmem:[%s1377_s21 + $0x110] ss:$8 sps:$4 sm:$0xff]  }
  0x18   : > { %703 = vmatpush1.bf16.msra.mxu1 %v1221_v5  ;;  %814 = vmatpush1.bf16.msra.mxu0 %v1262_v16  ;;  %v1237_v20 = vld [vmem:[%s1377_s21 + $0x74] ss:$8 sps:$4 sm:$0xff]   ;;  %v1239_v22 = vld [vmem:[%s1377_s21 + $0x70] ss:$8 sps:$4 sm:$0xff]   ;;  %v1240_v23 = vld [vmem:[%s1377_s21 + $0x84] ss:$8 sps:$4 sm:$0xff]  }
  0x19   : > { %704 = vmatprep.subr.bf16.mxu1 %v1222_v6  ;;  %815 = vmatprep.subr.bf16.mxu0 %v1264_v17  ;;  %v1242_v24 = vld [vmem:[%s1377_s21 + $0x80] ss:$8 sps:$4 sm:$0xff]   ;;  %v1243_v25 = vld [vmem:[%s1377_s21 + $0x94] ss:$8 sps:$4 sm:$0xff]   ;;  %v1245_v27 = vld [vmem:[%s1377_s21 + $0x90] ss:$8 sps:$4 sm:$0xff]  }
  0x1a   : > { %v1246_v29 = vld [vmem:[%s1377_s21 + $0xa4] ss:$8 sps:$4 sm:$0xff]   ;;  %v1248_v33 = vld [vmem:[%s1377_s21 + $0xa0] ss:$8 sps:$4 sm:$0xff]   ;;  %v1249_v34 = vld [vmem:[%s1377_s21 + $0xb4] ss:$8 sps:$4 sm:$0xff]   ;;  %337 = vperm.xlu0 %1214, %v287_v45   ;;  %342 = vperm.xlu1 %1215, %v288_v46  }
  0x1b   : > { %v1251_v38 = vld [vmem:[%s1377_s21 + $0xb0] ss:$8 sps:$4 sm:$0xff]   ;;  %v1252_v39 = vld [vmem:[%s1377_s21 + $0xc4] ss:$8 sps:$4 sm:$0xff]   ;;  %v1254_v42 = vld [vmem:[%s1377_s21 + $0xc0] ss:$8 sps:$4 sm:$0xff]  }
  0x1c   : > { %705 = vmatpush1.bf16.msra.mxu1 %v1224_v7  ;;  %816 = vmatpush1.bf16.msra.mxu0 %v1268_v19  ;;  %v1255_v43 = vld [vmem:[%s1377_s21 + $0xd4] ss:$8 sps:$4 sm:$0xff]   ;;  %v1257_v47 = vld [vmem:[%s1377_s21 + $0xd0] ss:$8 sps:$4 sm:$0xff]   ;;  %v1260_v48 = vld [vmem:[%s1377_s21 + $0xe4] ss:$8 sps:$4 sm:$0xff]  }
  0x1d   : > { %706 = vmatprep.subr.bf16.mxu1 %v1225_v8  ;;  %v1263_v51 = vld [vmem:[%s1377_s21 + $0xe0] ss:$8 sps:$4 sm:$0xff]   ;;  %v1266_v52 = vld [vmem:[%s1377_s21 + $0xf4] ss:$8 sps:$4 sm:$0xff]   ;;  %v1269_v56 = vld [vmem:[%s1377_s21 + $0xf0] ss:$8 sps:$4 sm:$0xff]  }
  0x1e   : > { %347 = vperm.xlu0 %1214, %v289_v49   ;;  %352 = vperm.xlu1 %1215, %v290_v50   ;;  %v1281_v2 = vld [vmem:[%s1667_s1 + $0x30] ss:$12 sps:$4 sm:$0xff]   ;;  %v1282_v3 = vld [vmem:[%s1667_s1 + $0x4c] ss:$12 sps:$4 sm:$0xff]   ;;  %v1285_v5 = vld [vmem:[%s1667_s1 + $0x48] ss:$12 sps:$4 sm:$0xff]  }
  0x1f   : > { %1113 = vmatmul.mubr.msk.bf16.vlgmr.msra.gmra.mrb[0].mxu0 %vm675_vm0, %v1273_v21  ;;  %v1300_v4 = vld [vmem:[%s1667_s1 + $0xb0] ss:$12 sps:$4 sm:$0xff]   ;;  %v1289_v6 = vld [vmem:[%s1667_s1 + $0x60] ss:$12 sps:$4 sm:$0xff]   ;;  %v1293_v8 = vld [vmem:[%s1667_s1 + $0x78] ss:$12 sps:$4 sm:$0xff]  }
  0x20   : > { %707 = vmatpush1.bf16.msra.mxu1 %v1227_v9  ;;  %855 = vmatprep.mubr.bf16.mxu0 %v1326_v0  ;;  %v1290_v7 = vld [vmem:[%s1667_s1 + $0x7c] ss:$12 sps:$4 sm:$0xff]   ;;  %v1294_v9 = vld [vmem:[%s1667_s1 + $0x94] ss:$12 sps:$4 sm:$0xff]  }
  0x21   : > { %708 = vmatprep.subr.bf16.mxu1 %v1228_v10  ;;  %v1297_v10 = vld [vmem:[%s1667_s1 + $0x90] ss:$12 sps:$4 sm:$0xff]  }
  0x22   : > { %357 = vperm.xlu0 %1214, %v291_v54   ;;  %362 = vperm.xlu1 %1215, %v292_v55  }
  0x24   : > { %709 = vmatpush1.bf16.msra.mxu1 %v1230_v11  ;;  %v1298_v11 = vld [vmem:[%s1667_s1 + $0xac] ss:$12 sps:$4 sm:$0xff]  }
  0x25   : > { %710 = vmatprep.subr.bf16.mxu1 %v1231_v12  ;;  %v1301_v12 = vld [vmem:[%s1667_s1 + $0xa8] ss:$12 sps:$4 sm:$0xff]  }
  0x26   : > { %367 = vperm.xlu0 %1214, %v293_v57   ;;  %372 = vperm.xlu1 %1215, %v294_v59  }
  0x27   : > { %1114 = vmatmul.mubr.msk.bf16.gmra.mrb[4].mxu0 %vm675_vm0, %v1276_v26 }
  0x28   : > { %711 = vmatpush1.bf16.msra.mxu1 %v1233_v13  ;;  %865 = vmatprep.mubr.bf16.mxu0 %v1326_v0 }
  0x29   : > { %712 = vmatprep.subr.bf16.mxu1 %v1234_v15 }
  0x2c   : > { %713 = vmatpush1.bf16.msra.mxu1 %v1236_v18 }
  0x2d   : > { %714 = vmatprep.subr.bf16.mxu1 %v1237_v20 }
  0x2f   : > { %1115 = vmatmul.mubr.msk.bf16.gmra.mrb[8].mxu0 %vm675_vm0, %v1280_v35 }
  0x30   : > { %715 = vmatpush1.bf16.msra.mxu1 %v1239_v22  ;;  %875 = vmatprep.mubr.bf16.mxu0 %v1326_v0 }
  0x31   : > { %716 = vmatprep.subr.bf16.mxu1 %v1240_v23 }
  0x34   : > { %717 = vmatpush1.bf16.msra.mxu1 %v1242_v24 }
  0x35   : > { %718 = vmatprep.subr.bf16.mxu1 %v1243_v25 }
  0x37   : > { %1116 = vmatmul.mubr.msk.bf16.gmra.mrb[12].mxu0 %vm675_vm0, %v1284_v44 }
  0x38   : > { %719 = vmatpush1.bf16.msra.mxu1 %v1245_v27  ;;  %885 = vmatprep.mubr.bf16.mxu0 %v1326_v0 }
  0x39   : > { %720 = vmatprep.subr.bf16.mxu1 %v1246_v29 }
  0x3c   : > { %721 = vmatpush1.bf16.msra.mxu1 %v1248_v33 }
  0x3d   : > { %722 = vmatprep.subr.bf16.mxu1 %v1249_v34 }
  0x3f   : > { %1117 = vmatmul.mubr.msk.bf16.gmra.mrb[16].mxu0 %vm675_vm0, %v1288_v53 }
  0x40   : > { %723 = vmatpush1.bf16.msra.mxu1 %v1251_v38  ;;  %895 = vmatprep.mubr.bf16.mxu0 %v1326_v0 }
  0x41   : > { %724 = vmatprep.subr.bf16.mxu1 %v1252_v39 }
  0x44   : > { %725 = vmatpush1.bf16.msra.mxu1 %v1254_v42 }
  0x45   : > { %726 = vmatprep.subr.bf16.mxu1 %v1255_v43 }
  0x47   : > { %1118 = vmatmul.mubr.msk.bf16.gmra.mrb[20].mxu0 %vm675_vm0, %v1292_v61 }
  0x48   : > { %727 = vmatpush1.bf16.msra.mxu1 %v1257_v47  ;;  %905 = vmatprep.mubr.bf16.mxu0 %v1326_v0 }
  0x49   : > { %728 = vmatprep.subr.bf16.mxu1 %v1260_v48 }
  0x4c   : > { %729 = vmatpush1.bf16.msra.mxu1 %v1263_v51 }
  0x4d   : > { %730 = vmatprep.subr.bf16.mxu1 %v1266_v52 }
  0x4f   : > { %1119 = vmatmul.mubr.msk.bf16.gmra.mrb[24].mxu0 %vm675_vm0, %v1296_v1 }
  0x50   : > { %731 = vmatpush1.bf16.msra.mxu1 %v1269_v56  ;;  %915 = vmatprep.mubr.bf16.mxu0 %v1326_v0  ;;  %v1286_v0 = vld [vmem:[%s1667_s1 + $0x64] ss:$12 sps:$4 sm:$0xff]  }
  0x53   : > { %733 = vmatmul.mubr.bf16.vlgmr.msra.gmra.mrb[0].mxu1 %v1270_v58 }
  0x54   : > { %742 = vmatprep.mubr.bf16.mxu1 %v1274_v60 }
  0x57   : > { %1120 = vmatmul.mubr.msk.bf16.gmra.mrb[28].mxu0 %vm675_vm0, %v1300_v4 }
  0x5b   : > { %743 = vmatmul.mubr.bf16.gmra.mrb[4].mxu1 %v1277_v62 }
  0x5c   : > { %752 = vmatprep.mubr.bf16.mxu1 %v1278_v63 }
  0x63   : > { %753 = vmatmul.mubr.bf16.gmra.mrb[8].mxu1 %v1281_v2 }
  0x64   : > { %762 = vmatprep.mubr.bf16.mxu1 %v1282_v3 }
  0x6b   : > { %763 = vmatmul.mubr.bf16.gmra.mrb[12].mxu1 %v1285_v5 }
  0x6c   : > { %772 = vmatprep.mubr.bf16.mxu1 %v1286_v0 }
  0x73   : > { %773 = vmatmul.mubr.bf16.gmra.mrb[16].mxu1 %v1289_v6 }
  0x74   : > { %782 = vmatprep.mubr.bf16.mxu1 %v1290_v7 }
  0x7b   : > { %783 = vmatmul.mubr.bf16.gmra.mrb[20].mxu1 %v1293_v8 }
  0x7c   : > { %792 = vmatprep.mubr.bf16.mxu1 %v1294_v9 }
  0x83   : > { %793 = vmatmul.mubr.bf16.gmra.mrb[24].mxu1 %v1297_v10 }
  0x84   : > { %802 = vmatprep.mubr.bf16.mxu1 %v1298_v11 }
  0x88   : > { %v298_v29 = vpop.permute.xlu0 %297  ;;  %v308_v45 = vpop.permute.xlu1 %307 }
  0x8b   : > { %803 = vmatmul.mubr.bf16.gmra.mrb[28].mxu1 %v1301_v12 }
  0x8c   : > { %v303_v35 = vpop.permute.xlu0 %302  ;;  %v313_v55 = vpop.permute.xlu1 %312 }
  0x90   : > { %v318_v0 = vpop.permute.xlu0 %317  ;;  %v323_v9 = vpop.permute.xlu1 %322 }
  0xf2   : > { %v847_v13 = vpop.f32.mrb[0].mxu0 }
  0xf3   : > { %v849_v14 = vpop.f32.mrb[1].mxu0 }
  0xf4   : > { %v851_v15 = vpop.f32.mrb[2].mxu0 }
  0xf5   : > { %v853_v16 = vpop.f32.mrb[3].mxu0 }
  0xfa   : > { %v857_v17 = vpop.f32.mrb[4].mxu0 }
  0xfb   : > { %v859_v18 = vpop.f32.mrb[5].mxu0 }
  0xfc   : > { %v861_v19 = vpop.f32.mrb[6].mxu0 }
  0xfd   : > { %v863_v20 = vpop.f32.mrb[7].mxu0 }
 0x102   : > { %v1547_v21 = vpop.f32.mrb[8].mxu0 }
 0x103   : > { %v1549_v22 = vpop.f32.mrb[9].mxu0 }
 0x104   : > { %v1551_v23 = vpop.f32.mrb[10].mxu0 }
 0x105   : > { %v1553_v24 = vpop.f32.mrb[11].mxu0 }
 0x10a   : > { %v1555_v25 = vpop.f32.mrb[12].mxu0 }
 0x10b   : > { %v1557_v26 = vpop.f32.mrb[13].mxu0 }
 0x10c   : > { %v1559_v27 = vpop.f32.mrb[14].mxu0 }
 0x10d   : > { %v1561_v28 = vpop.f32.mrb[15].mxu0 }
 0x112   : > { %v1563_v30 = vpop.f32.mrb[16].mxu0 }
 0x113   : > { %v1565_v31 = vpop.f32.mrb[17].mxu0 }
 0x114   : > { %v1567_v32 = vpop.f32.mrb[18].mxu0 }
 0x115   : > { %v1569_v33 = vpop.f32.mrb[19].mxu0 }
 0x11a   : > { %v1577_v43 = vpop.f32.mrb[20].mxu0 }
 0x11b   : > { %v1579_v47 = vpop.f32.mrb[21].mxu0 }
 0x11c   : > { %v1582_v49 = vpop.f32.mrb[22].mxu0 }
 0x11d   : > { %v1585_v51 = vpop.f32.mrb[23].mxu0 }
 0x122   : > { %v1589_v61 = vpop.f32.mrb[24].mxu0 }
 0x123   : > { %v1591_v1 = vpop.f32.mrb[25].mxu0 }
 0x124   : > { %v1594_v3 = vpop.f32.mrb[26].mxu0 }
 0x125   : > { %v1597_v5 = vpop.f32.mrb[27].mxu0 }
 0x126   : > { %v734_v34 = vpop.f32.mrb[0].mxu1 }
 0x127   : > { %v735_v36 = vadd.f32 %v734_v34, %v298_v29  ;;  %v736_v37 = vpop.f32.mrb[1].mxu1 }
 0x128   : > { %v737_v38 = vadd.f32 %v736_v37, %v298_v29  ;;  %v738_v39 = vpop.f32.mrb[2].mxu1  ;;  %v333_v37 = vpop.permute.xlu1 %332 }
 0x129   : > { %v848_v40 = vadd.f32 %v847_v13, %v735_v36  ;;  %v739_v41 = vadd.f32 %v738_v39, %v303_v35  ;;  %v740_v42 = vpop.f32.mrb[3].mxu1 }
 0x12a   : > { %v850_v44 = vadd.f32 %v849_v14, %v737_v38  ;;  %v741_v46 = vadd.f32 %v740_v42, %v303_v35 }
 0x12b   : > { %926 = vst [vmem:[%s1575_s8] sm:$0xff] %v848_v40  ;;  %v852_v48 = vadd.f32 %v851_v15, %v739_v41  ;;  %v1602_v15 = vpop.f32.mrb[28].mxu0 }
 0x12c   : > { %927 = vst [vmem:[%s1575_s8 + $0x8] sm:$0xff] %v850_v44  ;;  %v854_v50 = vadd.f32 %v853_v16, %v741_v46 }
 0x12d   : > { %928 = vst [vmem:[%s1575_s8 + $0x10] sm:$0xff] %v852_v48 }
 0x12e   : > { %929 = vst [vmem:[%s1575_s8 + $0x18] sm:$0xff] %v854_v50  ;;  %v744_v52 = vpop.f32.mrb[4].mxu1 }
 0x12f   : > { %v745_v53 = vadd.f32 %v744_v52, %v308_v45  ;;  %v746_v54 = vpop.f32.mrb[5].mxu1  ;;  %v343_v52 = vpop.permute.xlu1 %342 }
 0x130   : > { %v747_v56 = vadd.f32 %v746_v54, %v308_v45  ;;  %v748_v57 = vpop.f32.mrb[6].mxu1 }
 0x131   : > { %v858_v58 = vadd.f32 %v857_v17, %v745_v53  ;;  %v749_v59 = vadd.f32 %v748_v57, %v313_v55  ;;  %v750_v60 = vpop.f32.mrb[7].mxu1 }
 0x132   : > { %v860_v62 = vadd.f32 %v859_v18, %v747_v56  ;;  %v751_v63 = vadd.f32 %v750_v60, %v313_v55  ;;  %v1605_v18 = vpop.f32.mrb[29].mxu0 }
 0x133   : > { %930 = vst [vmem:[%s1575_s8 + $0x20] sm:$0xff] %v858_v58  ;;  %v862_v2 = vadd.f32 %v861_v19, %v749_v59 }
 0x134   : > { %931 = vst [vmem:[%s1575_s8 + $0x28] sm:$0xff] %v860_v62  ;;  %v864_v4 = vadd.f32 %v863_v20, %v751_v63  ;;  %v1609_v20 = vpop.f32.mrb[30].mxu0  ;;  %v353_v63 = vpop.permute.xlu1 %352 }
 0x135   : > { %932 = vst [vmem:[%s1575_s8 + $0x30] sm:$0xff] %v862_v2  ;;  %v1613_v34 = vpop.f32.mrb[31].mxu0 }
 0x136   : > { %933 = vst [vmem:[%s1575_s8 + $0x38] sm:$0xff] %v864_v4  ;;  %v754_v6 = vpop.f32.mrb[8].mxu1 }
 0x137   : > { %v755_v7 = vadd.f32 %v754_v6, %v318_v0  ;;  %v756_v8 = vpop.f32.mrb[9].mxu1 }
 0x138   : > { %v757_v10 = vadd.f32 %v756_v8, %v318_v0  ;;  %v758_v11 = vpop.f32.mrb[10].mxu1 }
 0x139   : > { %v868_v12 = vadd.f32 %v1547_v21, %v755_v7  ;;  %v759_v13 = vadd.f32 %v758_v11, %v323_v9  ;;  %v760_v14 = vpop.f32.mrb[11].mxu1  ;;  %v328_v21 = vpop.permute.xlu0 %327 }
 0x13a   : > { %v870_v16 = vadd.f32 %v1549_v22, %v757_v10  ;;  %v761_v17 = vadd.f32 %v760_v14, %v323_v9 }
 0x13b   : > { %934 = vst [vmem:[%s1575_s8 + $0x40] sm:$0xff] %v868_v12  ;;  %v872_v19 = vadd.f32 %v1551_v23, %v759_v13  ;;  %v363_v12 = vpop.permute.xlu1 %362 }
 0x13c   : > { %935 = vst [vmem:[%s1575_s8 + $0x48] sm:$0xff] %v870_v16  ;;  %v874_v29 = vadd.f32 %v1553_v24, %v761_v17 }
 0x13d   : > { %936 = vst [vmem:[%s1575_s8 + $0x50] sm:$0xff] %v872_v19  ;;  %v338_v46 = vpop.permute.xlu0 %337 }
 0x13e   : > { %937 = vst [vmem:[%s1575_s8 + $0x58] sm:$0xff] %v874_v29  ;;  %v764_v22 = vpop.f32.mrb[12].mxu1 }
 0x13f   : > { %v765_v35 = vadd.f32 %v764_v22, %v328_v21  ;;  %v766_v36 = vpop.f32.mrb[13].mxu1 }
 0x140   : > { %v767_v38 = vadd.f32 %v766_v36, %v328_v21  ;;  %v768_v23 = vpop.f32.mrb[14].mxu1  ;;  %v373_v36 = vpop.permute.xlu1 %372 }
 0x141   : > { %v878_v39 = vadd.f32 %v1555_v25, %v765_v35  ;;  %v769_v40 = vadd.f32 %v768_v23, %v333_v37  ;;  %v770_v41 = vpop.f32.mrb[15].mxu1  ;;  %v348_v59 = vpop.permute.xlu0 %347 }
 0x142   : > { %v880_v24 = vadd.f32 %v1557_v26, %v767_v38  ;;  %v771_v42 = vadd.f32 %v770_v41, %v333_v37 }
 0x143   : > { %938 = vst [vmem:[%s1575_s8 + $0x60] sm:$0xff] %v878_v39  ;;  %v882_v44 = vadd.f32 %v1559_v27, %v769_v40 }
 0x144   : > { %939 = vst [vmem:[%s1575_s8 + $0x68] sm:$0xff] %v880_v24  ;;  %v884_v45 = vadd.f32 %v1561_v28, %v771_v42 }
 0x145   : > { %940 = vst [vmem:[%s1575_s8 + $0x70] sm:$0xff] %v882_v44  ;;  %v358_v9 = vpop.permute.xlu0 %357 }
 0x146   : > { %941 = vst [vmem:[%s1575_s8 + $0x78] sm:$0xff] %v884_v45  ;;  %v774_v48 = vpop.f32.mrb[16].mxu1 }
 0x147   : > { %v775_v50 = vadd.f32 %v774_v48, %v338_v46  ;;  %v776_v25 = vpop.f32.mrb[17].mxu1 }
 0x148   : > { %v777_v53 = vadd.f32 %v776_v25, %v338_v46  ;;  %v778_v26 = vpop.f32.mrb[18].mxu1 }
 0x149   : > { %v888_v54 = vadd.f32 %v1563_v30, %v775_v50  ;;  %v779_v55 = vadd.f32 %v778_v26, %v343_v52  ;;  %v780_v27 = vpop.f32.mrb[19].mxu1  ;;  %v368_v21 = vpop.permute.xlu0 %367 }
 0x14a   : > { %v890_v56 = vadd.f32 %v1565_v31, %v777_v53  ;;  %v781_v57 = vadd.f32 %v780_v27, %v343_v52 }
 0x14b   : > { %942 = vst [vmem:[%s1575_s8 + $0x80] sm:$0xff] %v888_v54  ;;  %v892_v28 = vadd.f32 %v1567_v32, %v779_v55 }
 0x14c   : > { %943 = vst [vmem:[%s1575_s8 + $0x88] sm:$0xff] %v890_v56  ;;  %v894_v58 = vadd.f32 %v1569_v33, %v781_v57 }
 0x14d   : > { %944 = vst [vmem:[%s1575_s8 + $0x90] sm:$0xff] %v892_v28 }
 0x14e   : > { %945 = vst [vmem:[%s1575_s8 + $0x98] sm:$0xff] %v894_v58  ;;  %v784_v60 = vpop.f32.mrb[20].mxu1 }
 0x14f   : > { %v785_v62 = vadd.f32 %v784_v60, %v348_v59  ;;  %v786_v30 = vpop.f32.mrb[21].mxu1 }
 0x150   : > { %v787_v2 = vadd.f32 %v786_v30, %v348_v59  ;;  %v788_v31 = vpop.f32.mrb[22].mxu1 }
 0x151   : > { %v898_v4 = vadd.f32 %v1577_v43, %v785_v62  ;;  %v789_v0 = vadd.f32 %v788_v31, %v353_v63  ;;  %v790_v32 = vpop.f32.mrb[23].mxu1 }
 0x152   : > { %v900_v6 = vadd.f32 %v1579_v47, %v787_v2  ;;  %v791_v7 = vadd.f32 %v790_v32, %v353_v63 }
 0x153   : > { %946 = vst [vmem:[%s1575_s8 + $0xa0] sm:$0xff] %v898_v4  ;;  %v902_v33 = vadd.f32 %v1582_v49, %v789_v0 }
 0x154   : > { %947 = vst [vmem:[%s1575_s8 + $0xa8] sm:$0xff] %v900_v6  ;;  %v904_v8 = vadd.f32 %v1585_v51, %v791_v7 }
 0x155   : > { %948 = vst [vmem:[%s1575_s8 + $0xb0] sm:$0xff] %v902_v33 }
 0x156   : > { %949 = vst [vmem:[%s1575_s8 + $0xb8] sm:$0xff] %v904_v8  ;;  %v794_v10 = vpop.f32.mrb[24].mxu1 }
 0x157   : > { %v795_v11 = vadd.f32 %v794_v10, %v358_v9  ;;  %v796_v43 = vpop.f32.mrb[25].mxu1 }
 0x158   : > { %v797_v13 = vadd.f32 %v796_v43, %v358_v9  ;;  %v798_v47 = vpop.f32.mrb[26].mxu1 }
 0x159   : > { %v908_v14 = vadd.f32 %v1589_v61, %v795_v11  ;;  %v799_v16 = vadd.f32 %v798_v47, %v363_v12  ;;  %v800_v49 = vpop.f32.mrb[27].mxu1 }
 0x15a   : > { %v910_v17 = vadd.f32 %v1591_v1, %v797_v13  ;;  %v801_v19 = vadd.f32 %v800_v49, %v363_v12 }
 0x15b   : > { %950 = vst [vmem:[%s1575_s8 + $0xc0] sm:$0xff] %v908_v14  ;;  %v912_v51 = vadd.f32 %v1594_v3, %v799_v16 }
 0x15c   : > { %951 = vst [vmem:[%s1575_s8 + $0xc8] sm:$0xff] %v910_v17  ;;  %v914_v29 = vadd.f32 %v1597_v5, %v801_v19 }
 0x15d   : > { %952 = vst [vmem:[%s1575_s8 + $0xd0] sm:$0xff] %v912_v51 }
 0x15e   : > { %953 = vst [vmem:[%s1575_s8 + $0xd8] sm:$0xff] %v914_v29  ;;  %v804_v22 = vpop.f32.mrb[28].mxu1 }
 0x15f   : > { %v805_v61 = vadd.f32 %v804_v22, %v368_v21  ;;  %v806_v35 = vpop.f32.mrb[29].mxu1 }
 0x160   : > { %v807_v37 = vadd.f32 %v806_v35, %v368_v21  ;;  %v808_v1 = vpop.f32.mrb[30].mxu1 }
 0x161   : > { %v918_v38 = vadd.f32 %v1602_v15, %v805_v61  ;;  %v809_v23 = vadd.f32 %v808_v1, %v373_v36  ;;  %v810_v3 = vpop.f32.mrb[31].mxu1 }
 0x162   : > { %v920_v39 = vadd.f32 %v1605_v18, %v807_v37  ;;  %v811_v40 = vadd.f32 %v810_v3, %v373_v36 }
 0x163   : > { %954 = vst [vmem:[%s1575_s8 + $0xe0] sm:$0xff] %v918_v38  ;;  %v922_v5 = vadd.f32 %v1609_v20, %v809_v23 }
 0x164   : > { %955 = vst [vmem:[%s1575_s8 + $0xe8] sm:$0xff] %v920_v39  ;;  %v924_v41 = vadd.f32 %v1613_v34, %v811_v40 }
 0x165   : > { %956 = vst [vmem:[%s1575_s8 + $0xf0] sm:$0xff] %v922_v5 }
 0x166   : > { %957 = vst [vmem:[%s1575_s8 + $0xf8] sm:$0xff] %v924_v41 }
 0x167 PF: > { %s13_s14 = sadd.s32 1, %s1324_s14   ;;  %s1670_s12 = smov %s1320_s13 }
 0x168   : > { %p10_p5 = scmp.ge.s32.totalorder %s13_s14, 4   ;;  %s1671_s13 = smov %s1673_s15 }
 0x16a   :  { %12 = sbr.rel (!%p10_p5) target bundleno = 2 (0x2), region = 62 }

</bundles_post_ra>
